<compile_context>
chip_gen: v7x
topology: tpu7x:2x2x1
jax: 0.10.0
libtpu: 0.0.40
codegen_flags: <defaults>
</compile_context>

<pallas_src>
import jax
import jax.numpy as jnp
from jax.experimental import pallas as pl
from jax.experimental.pallas import tpu as pltpu

H = 32          # lstm_hidden_size == cnn_hidden_size
G = 4 * H       # gate width (i, f, g, o) on the 128-lane axis

# Parameter-slab row layout: a single (48, 128) f32 array -> one DMA instead of seven.
# W_hh^T is placed first so its 32 rows start on a sublane-tile boundary (zero-copy view).
ROW_WHH = 0                 # LSTM W_hh^T              (H, 4H)   rows 0..31
ROW_WIH = 32                # LSTM W_ih^T              (1, 4H)
ROW_BG  = 33                # b_ih + b_hh              (1, 4H)
ROW_CW  = 34                # Conv1d taps (k, out_ch)  (3, H)    rows 34..36, lanes 0:H
ROW_CB  = 37                # Conv1d bias              (1, H)    lanes 0:H
ROW_DWL = 38                # Linear weight, lstm half (1, H)    lanes 0:H
ROW_DWC = 39                # Linear weight, cnn half  (1, H)    lanes 0:H
ROW_DB  = 40                # Linear bias              (1, 1)    lane 0
SLAB_ROWS = 48              # multiple of 8 sublanes -> clean (8,128) tiling


def combined_kernel(x_ref, slab_ref, out_ref):
    # x_ref:    (B, T)      lane-dense input sequence (input_size = 1, squeezed)
    # slab_ref: (48, 128)   packed parameters (ROW_* layout above)
    # out_ref:  (B, 1)
    B, T = x_ref.shape

    # Load parameters once; they stay resident across the fully-unrolled loop.
    whh = slab_ref[ROW_WHH:ROW_WHH + H, :]            # (H, 4H)  sublane-aligned view
    whh_bf = whh.astype(jnp.bfloat16)                 # hoisted one-time cast for the MXU
    wih = slab_ref[ROW_WIH:ROW_WIH + 1, :]            # (1, 4H)
    bg  = slab_ref[ROW_BG:ROW_BG + 1, :]              # (1, 4H)

    # Hoist the input projection out of the recurrence:
    # pre[t] = x[:, t] * W_ih^T + (b_ih + b_hh), computed once for all T steps.
    x_all = x_ref[...]                                # (B, T)   one VMEM tile
    x_tb = jnp.transpose(x_all)                       # (T, B)   one-time tiny transpose
    pre = x_tb[:, :, None] * wih[None, :, :] + bg[None, :, :]   # (T, B, 4H)

    h = jnp.zeros((B, H), jnp.float32)
    c = jnp.zeros((B, H), jnp.float32)

    # Fully unrolled recurrence (T small & static): per step, one bf16 (B,H)@(H,4H) MXU
    # matmul (f32 accumulate) + one sigmoid pass over the whole gate vreg + 2 tanh pushes.
    for t in range(T):
        gates = pre[t] + jnp.dot(h.astype(jnp.bfloat16), whh_bf,
                                 preferred_element_type=jnp.float32)   # (B, 4H)
        sig = jax.nn.sigmoid(gates)                   # one EUP pass over all 4H lanes
        g = jnp.tanh(gates[:, 2 * H:3 * H])
        i = sig[:, 0:H]
        f = sig[:, H:2 * H]
        o = sig[:, 3 * H:4 * H]
        c = f * c + i * g
        h = o * jnp.tanh(c)                           # after last t: lstm_out[:, -1, :]

    # Conv1d(1 -> H, k=3, padding=1) at the last output position t = T-1:
    # taps k=0 -> x[T-2], k=1 -> x[T-1], k=2 -> right zero-padding (dropped).
    cw0 = slab_ref[ROW_CW + 0:ROW_CW + 1, 0:H]        # (1, H)
    cw1 = slab_ref[ROW_CW + 1:ROW_CW + 2, 0:H]        # (1, H)
    cb  = slab_ref[ROW_CB:ROW_CB + 1, 0:H]            # (1, H)
    cnn_last = x_all[:, T - 1:T] * cw1 + cb           # (B, 1)*(1, H) -> (B, H)
    if T >= 2:                                        # static guard: T==1 hits left zero-pad
        cnn_last = cnn_last + x_all[:, T - 2:T - 1] * cw0

    # Linear(2H -> 1): two aligned mul + lane-reductions (no lane concat / shuffle).
    # NOTE: output stays (B, 1) to match the module; a lane-dense (1, B) store only
    # pays off once B is large.
    dwl = slab_ref[ROW_DWL:ROW_DWL + 1, 0:H]          # (1, H)  lstm half of dense weight
    dwc = slab_ref[ROW_DWC:ROW_DWC + 1, 0:H]          # (1, H)  cnn half of dense weight
    db  = slab_ref[ROW_DB:ROW_DB + 1, 0:1]            # (1, 1)
    out_ref[...] = (jnp.sum(h * dwl, axis=1, keepdims=True)
                    + jnp.sum(cnn_last * dwc, axis=1, keepdims=True)
                    + db)


def pack_params(params):
    """Build the (48, 128) parameter slab once (hoist out of the per-call path)."""
    f32 = jnp.float32

    def pad_lanes(rows):                              # (r, w) -> (r, G) zero-padded
        rows = rows.astype(f32)
        r, w = rows.shape
        return jnp.concatenate([rows, jnp.zeros((r, G - w), f32)], axis=1)

    whh_t = params["w_hh"].T.astype(f32)                              # rows 0..31
    wih_t = params["w_ih"][:, 0].astype(f32)[None, :]                 # row 32
    bg = (params["b_ih"] + params["b_hh"]).astype(f32)[None, :]       # row 33
    conv_taps = pad_lanes(jnp.transpose(params["conv_w"][:, 0, :]))   # rows 34..36
    conv_b = pad_lanes(params["conv_b"][None, :])                     # row 37
    dwl = pad_lanes(params["dense_w"][:, 0:H])                        # row 38
    dwc = pad_lanes(params["dense_w"][:, H:2 * H])                    # row 39
    db = pad_lanes(params["dense_b"][None, :])                        # row 40
    tail = jnp.zeros((SLAB_ROWS - 41, G), f32)                        # rows 41..47
    return jnp.concatenate(
        [whh_t, wih_t, bg, conv_taps, conv_b, dwl, dwc, db, tail], axis=0)


def combined_forward(x, slab):
    """x: (B, T, 1) float32; slab: prepacked (SLAB_ROWS, 128); returns (B, 1) float32."""
    B, T, _ = x.shape
    x_bt = x[:, :, 0].astype(jnp.float32)             # (B, T) lane-dense, cheap squeeze
    vmem = pl.BlockSpec(memory_space=pltpu.MemorySpace.VMEM)
    # TODO(synk): if B scales, add a batch grid (B tiled to multiples of 8) with
    # dimension_semantics=("parallel",) so v7x's second TensorCore takes half the batch
    # (re-derive the tile for v7x's 64 MiB VMEM); if T scales, stream x over a T grid.
    return pl.pallas_call(
        combined_kernel,
        out_shape=jax.ShapeDtypeStruct((B, 1), jnp.float32),
        in_specs=[vmem, vmem],
        out_specs=vmem,
    )(x_bt, slab)


def reference_forward(x, p):
    """Pure-JAX f32 reference mirroring the (repaired) PyTorch forward."""
    B, T, _ = x.shape
    h = jnp.zeros((B, H), jnp.float32)
    c = jnp.zeros((B, H), jnp.float32)
    for t in range(T):
        gates = (x[:, t, :] @ p["w_ih"].T + p["b_ih"]
                 + h @ p["w_hh"].T + p["b_hh"])
        i, f, g, o = jnp.split(gates, 4, axis=1)
        c = jax.nn.sigmoid(f) * c + jax.nn.sigmoid(i) * jnp.tanh(g)
        h = jax.nn.sigmoid(o) * jnp.tanh(c)
    xs = x[:, :, 0]
    cnn_last = (xs[:, T - 1:T] * p["conv_w"][:, 0, 1][None, :]
                + p["conv_b"][None, :])
    if T >= 2:
        cnn_last = cnn_last + xs[:, T - 2:T - 1] * p["conv_w"][:, 0, 0][None, :]
    concat = jnp.concatenate([h, cnn_last], axis=1)
    return concat @ p["dense_w"].T + p["dense_b"][None, :]


if __name__ == "__main__":
    key = jax.random.PRNGKey(0)
    kx, *kp = jax.random.split(key, 9)

    params = {
        "w_ih": 0.1 * jax.random.normal(kp[0], (4 * H, 1), jnp.float32),
        "w_hh": 0.1 * jax.random.normal(kp[1], (4 * H, H), jnp.float32),
        "b_ih": 0.1 * jax.random.normal(kp[2], (4 * H,), jnp.float32),
        "b_hh": 0.1 * jax.random.normal(kp[3], (4 * H,), jnp.float32),
        "conv_w": 0.1 * jax.random.normal(kp[4], (H, 1, 3), jnp.float32),
        "conv_b": 0.1 * jax.random.normal(kp[5], (H,), jnp.float32),
        "dense_w": 0.1 * jax.random.normal(kp[6], (1, 2 * H), jnp.float32),
        "dense_b": 0.1 * jax.random.normal(kp[7], (1,), jnp.float32),
    }

    B, T = 2, 8
    x = jax.random.normal(kx, (B, T, 1), jnp.float32)

    # Parameter slab packed ONCE, outside the per-forward hot path.
    slab = jax.block_until_ready(pack_params(params))

    out = combined_forward(x, slab)
    out = jax.block_until_ready(out)

    ref = reference_forward(x, params)
    assert out.shape == (B, 1)
    # bf16 MXU operands in the recurrence -> relaxed tolerance vs the pure-f32 reference.
    assert jnp.allclose(out, ref, atol=5e-3, rtol=1e-3), (out, ref)

    print("KERNEL_OK")
</pallas_src>

<mosaic_0001>
module attributes {stable_mosaic.version = 11 : i64} {
  func.func @combined_kernel(%arg0: memref<2x8xf32, #tpu.memory_space<vmem>>, %arg1: memref<48x128xf32, #tpu.memory_space<vmem>>, %arg2: memref<2x1xf32, #tpu.memory_space<vmem>>) attributes {dimension_semantics = [], scalar_prefetch = 0 : i64, scratch_operands = 0 : i64, tpu.core_type = #tpu.core_type<tc>} {
    %c0 = arith.constant 0 : index
    %c0_0 = arith.constant 0 : index
    %0 = vector.load %arg1[%c0, %c0_0] : memref<48x128xf32, #tpu.memory_space<vmem>>, vector<32x128xf32>
    %1 = arith.truncf %0 : vector<32x128xf32> to vector<32x128xbf16>
    %c32 = arith.constant 32 : index
    %c0_1 = arith.constant 0 : index
    %2 = vector.load %arg1[%c32, %c0_1] : memref<48x128xf32, #tpu.memory_space<vmem>>, vector<1x128xf32>
    %c33 = arith.constant 33 : index
    %c0_2 = arith.constant 0 : index
    %3 = vector.load %arg1[%c33, %c0_2] : memref<48x128xf32, #tpu.memory_space<vmem>>, vector<1x128xf32>
    %c0_3 = arith.constant 0 : index
    %c0_4 = arith.constant 0 : index
    %4 = vector.load %arg0[%c0_3, %c0_4] : memref<2x8xf32, #tpu.memory_space<vmem>>, vector<2x8xf32>
    %5 = tpu.transpose %4, [1, 0] : vector<2x8xf32> -> vector<8x2xf32>
    %6 = vector.shape_cast %5 : vector<8x2xf32> to vector<8x2x1xf32>
    %7 = vector.shape_cast %2 : vector<1x128xf32> to vector<1x1x128xf32>
    %8 = vector.broadcast %6 : vector<8x2x1xf32> to vector<8x2x128xf32>
    %9 = vector.broadcast %7 : vector<1x1x128xf32> to vector<8x2x128xf32>
    %10 = arith.mulf %8, %9 : vector<8x2x128xf32>
    %11 = vector.shape_cast %3 : vector<1x128xf32> to vector<1x1x128xf32>
    %12 = vector.broadcast %11 : vector<1x1x128xf32> to vector<8x2x128xf32>
    %13 = arith.addf %10, %12 : vector<8x2x128xf32>
    %cst = arith.constant 0.000000e+00 : f32
    %14 = vector.broadcast %cst : f32 to vector<2x32xf32>
    %cst_5 = arith.constant 0.000000e+00 : f32
    %15 = vector.broadcast %cst_5 : f32 to vector<2x32xf32>
    %16 = vector.extract_strided_slice %13 {offsets = [0, 0, 0], sizes = [1, 2, 128], strides = [1, 1, 1]} : vector<8x2x128xf32> to vector<1x2x128xf32>
    %17 = vector.shape_cast %16 : vector<1x2x128xf32> to vector<2x128xf32>
    %18 = arith.truncf %14 : vector<2x32xf32> to vector<2x32xbf16>
    %cst_6 = arith.constant dense<0.000000e+00> : vector<2x128xf32>
    %19 = tpu.matmul %18, %1, %cst_6 {dimension_numbers = #tpu.dot_dimension_numbers<[1], [0], [0], [1], [0, 0, 1, 1], [], []>} : vector<2x32xbf16>, vector<32x128xbf16>, vector<2x128xf32> -> vector<2x128xf32>
    %20 = arith.addf %17, %19 : vector<2x128xf32>
    %21 = arith.negf %20 : vector<2x128xf32>
    %22 = math.exp %21 : vector<2x128xf32>
    %cst_7 = arith.constant 1.000000e+00 : f32
    %23 = vector.broadcast %cst_7 : f32 to vector<2x128xf32>
    %24 = arith.addf %23, %22 : vector<2x128xf32>
    %25 = arith.divf %23, %24 : vector<2x128xf32>
    %26 = vector.extract_strided_slice %20 {offsets = [0, 64], sizes = [2, 32], strides = [1, 1]} : vector<2x128xf32> to vector<2x32xf32>
    %27 = math.tanh %26 : vector<2x32xf32>
    %28 = vector.extract_strided_slice %25 {offsets = [0, 0], sizes = [2, 32], strides = [1, 1]} : vector<2x128xf32> to vector<2x32xf32>
    %29 = vector.extract_strided_slice %25 {offsets = [0, 32], sizes = [2, 32], strides = [1, 1]} : vector<2x128xf32> to vector<2x32xf32>
    %30 = vector.extract_strided_slice %25 {offsets = [0, 96], sizes = [2, 32], strides = [1, 1]} : vector<2x128xf32> to vector<2x32xf32>
    %31 = arith.mulf %29, %15 : vector<2x32xf32>
    %32 = arith.mulf %28, %27 : vector<2x32xf32>
    %33 = arith.addf %31, %32 : vector<2x32xf32>
    %34 = math.tanh %33 : vector<2x32xf32>
    %35 = arith.mulf %30, %34 : vector<2x32xf32>
    %36 = vector.extract_strided_slice %13 {offsets = [1, 0, 0], sizes = [1, 2, 128], strides = [1, 1, 1]} : vector<8x2x128xf32> to vector<1x2x128xf32>
    %37 = vector.shape_cast %36 : vector<1x2x128xf32> to vector<2x128xf32>
    %38 = arith.truncf %35 : vector<2x32xf32> to vector<2x32xbf16>
    %cst_8 = arith.constant dense<0.000000e+00> : vector<2x128xf32>
    %39 = tpu.matmul %38, %1, %cst_8 {dimension_numbers = #tpu.dot_dimension_numbers<[1], [0], [0], [1], [0, 0, 1, 1], [], []>} : vector<2x32xbf16>, vector<32x128xbf16>, vector<2x128xf32> -> vector<2x128xf32>
    %40 = arith.addf %37, %39 : vector<2x128xf32>
    %41 = arith.negf %40 : vector<2x128xf32>
    %42 = math.exp %41 : vector<2x128xf32>
    %cst_9 = arith.constant 1.000000e+00 : f32
    %43 = vector.broadcast %cst_9 : f32 to vector<2x128xf32>
    %44 = arith.addf %43, %42 : vector<2x128xf32>
    %45 = arith.divf %43, %44 : vector<2x128xf32>
    %46 = vector.extract_strided_slice %40 {offsets = [0, 64], sizes = [2, 32], strides = [1, 1]} : vector<2x128xf32> to vector<2x32xf32>
    %47 = math.tanh %46 : vector<2x32xf32>
    %48 = vector.extract_strided_slice %45 {offsets = [0, 0], sizes = [2, 32], strides = [1, 1]} : vector<2x128xf32> to vector<2x32xf32>
    %49 = vector.extract_strided_slice %45 {offsets = [0, 32], sizes = [2, 32], strides = [1, 1]} : vector<2x128xf32> to vector<2x32xf32>
    %50 = vector.extract_strided_slice %45 {offsets = [0, 96], sizes = [2, 32], strides = [1, 1]} : vector<2x128xf32> to vector<2x32xf32>
    %51 = arith.mulf %49, %33 : vector<2x32xf32>
    %52 = arith.mulf %48, %47 : vector<2x32xf32>
    %53 = arith.addf %51, %52 : vector<2x32xf32>
    %54 = math.tanh %53 : vector<2x32xf32>
    %55 = arith.mulf %50, %54 : vector<2x32xf32>
    %56 = vector.extract_strided_slice %13 {offsets = [2, 0, 0], sizes = [1, 2, 128], strides = [1, 1, 1]} : vector<8x2x128xf32> to vector<1x2x128xf32>
    %57 = vector.shape_cast %56 : vector<1x2x128xf32> to vector<2x128xf32>
    %58 = arith.truncf %55 : vector<2x32xf32> to vector<2x32xbf16>
    %cst_10 = arith.constant dense<0.000000e+00> : vector<2x128xf32>
    %59 = tpu.matmul %58, %1, %cst_10 {dimension_numbers = #tpu.dot_dimension_numbers<[1], [0], [0], [1], [0, 0, 1, 1], [], []>} : vector<2x32xbf16>, vector<32x128xbf16>, vector<2x128xf32> -> vector<2x128xf32>
    %60 = arith.addf %57, %59 : vector<2x128xf32>
    %61 = arith.negf %60 : vector<2x128xf32>
    %62 = math.exp %61 : vector<2x128xf32>
    %cst_11 = arith.constant 1.000000e+00 : f32
    %63 = vector.broadcast %cst_11 : f32 to vector<2x128xf32>
    %64 = arith.addf %63, %62 : vector<2x128xf32>
    %65 = arith.divf %63, %64 : vector<2x128xf32>
    %66 = vector.extract_strided_slice %60 {offsets = [0, 64], sizes = [2, 32], strides = [1, 1]} : vector<2x128xf32> to vector<2x32xf32>
    %67 = math.tanh %66 : vector<2x32xf32>
    %68 = vector.extract_strided_slice %65 {offsets = [0, 0], sizes = [2, 32], strides = [1, 1]} : vector<2x128xf32> to vector<2x32xf32>
    %69 = vector.extract_strided_slice %65 {offsets = [0, 32], sizes = [2, 32], strides = [1, 1]} : vector<2x128xf32> to vector<2x32xf32>
    %70 = vector.extract_strided_slice %65 {offsets = [0, 96], sizes = [2, 32], strides = [1, 1]} : vector<2x128xf32> to vector<2x32xf32>
    %71 = arith.mulf %69, %53 : vector<2x32xf32>
    %72 = arith.mulf %68, %67 : vector<2x32xf32>
    %73 = arith.addf %71, %72 : vector<2x32xf32>
    %74 = math.tanh %73 : vector<2x32xf32>
    %75 = arith.mulf %70, %74 : vector<2x32xf32>
    %76 = vector.extract_strided_slice %13 {offsets = [3, 0, 0], sizes = [1, 2, 128], strides = [1, 1, 1]} : vector<8x2x128xf32> to vector<1x2x128xf32>
    %77 = vector.shape_cast %76 : vector<1x2x128xf32> to vector<2x128xf32>
    %78 = arith.truncf %75 : vector<2x32xf32> to vector<2x32xbf16>
    %cst_12 = arith.constant dense<0.000000e+00> : vector<2x128xf32>
    %79 = tpu.matmul %78, %1, %cst_12 {dimension_numbers = #tpu.dot_dimension_numbers<[1], [0], [0], [1], [0, 0, 1, 1], [], []>} : vector<2x32xbf16>, vector<32x128xbf16>, vector<2x128xf32> -> vector<2x128xf32>
    %80 = arith.addf %77, %79 : vector<2x128xf32>
    %81 = arith.negf %80 : vector<2x128xf32>
    %82 = math.exp %81 : vector<2x128xf32>
    %cst_13 = arith.constant 1.000000e+00 : f32
    %83 = vector.broadcast %cst_13 : f32 to vector<2x128xf32>
    %84 = arith.addf %83, %82 : vector<2x128xf32>
    %85 = arith.divf %83, %84 : vector<2x128xf32>
    %86 = vector.extract_strided_slice %80 {offsets = [0, 64], sizes = [2, 32], strides = [1, 1]} : vector<2x128xf32> to vector<2x32xf32>
    %87 = math.tanh %86 : vector<2x32xf32>
    %88 = vector.extract_strided_slice %85 {offsets = [0, 0], sizes = [2, 32], strides = [1, 1]} : vector<2x128xf32> to vector<2x32xf32>
    %89 = vector.extract_strided_slice %85 {offsets = [0, 32], sizes = [2, 32], strides = [1, 1]} : vector<2x128xf32> to vector<2x32xf32>
    %90 = vector.extract_strided_slice %85 {offsets = [0, 96], sizes = [2, 32], strides = [1, 1]} : vector<2x128xf32> to vector<2x32xf32>
    %91 = arith.mulf %89, %73 : vector<2x32xf32>
    %92 = arith.mulf %88, %87 : vector<2x32xf32>
    %93 = arith.addf %91, %92 : vector<2x32xf32>
    %94 = math.tanh %93 : vector<2x32xf32>
    %95 = arith.mulf %90, %94 : vector<2x32xf32>
    %96 = vector.extract_strided_slice %13 {offsets = [4, 0, 0], sizes = [1, 2, 128], strides = [1, 1, 1]} : vector<8x2x128xf32> to vector<1x2x128xf32>
    %97 = vector.shape_cast %96 : vector<1x2x128xf32> to vector<2x128xf32>
    %98 = arith.truncf %95 : vector<2x32xf32> to vector<2x32xbf16>
    %cst_14 = arith.constant dense<0.000000e+00> : vector<2x128xf32>
    %99 = tpu.matmul %98, %1, %cst_14 {dimension_numbers = #tpu.dot_dimension_numbers<[1], [0], [0], [1], [0, 0, 1, 1], [], []>} : vector<2x32xbf16>, vector<32x128xbf16>, vector<2x128xf32> -> vector<2x128xf32>
    %100 = arith.addf %97, %99 : vector<2x128xf32>
    %101 = arith.negf %100 : vector<2x128xf32>
    %102 = math.exp %101 : vector<2x128xf32>
    %cst_15 = arith.constant 1.000000e+00 : f32
    %103 = vector.broadcast %cst_15 : f32 to vector<2x128xf32>
    %104 = arith.addf %103, %102 : vector<2x128xf32>
    %105 = arith.divf %103, %104 : vector<2x128xf32>
    %106 = vector.extract_strided_slice %100 {offsets = [0, 64], sizes = [2, 32], strides = [1, 1]} : vector<2x128xf32> to vector<2x32xf32>
    %107 = math.tanh %106 : vector<2x32xf32>
    %108 = vector.extract_strided_slice %105 {offsets = [0, 0], sizes = [2, 32], strides = [1, 1]} : vector<2x128xf32> to vector<2x32xf32>
    %109 = vector.extract_strided_slice %105 {offsets = [0, 32], sizes = [2, 32], strides = [1, 1]} : vector<2x128xf32> to vector<2x32xf32>
    %110 = vector.extract_strided_slice %105 {offsets = [0, 96], sizes = [2, 32], strides = [1, 1]} : vector<2x128xf32> to vector<2x32xf32>
    %111 = arith.mulf %109, %93 : vector<2x32xf32>
    %112 = arith.mulf %108, %107 : vector<2x32xf32>
    %113 = arith.addf %111, %112 : vector<2x32xf32>
    %114 = math.tanh %113 : vector<2x32xf32>
    %115 = arith.mulf %110, %114 : vector<2x32xf32>
    %116 = vector.extract_strided_slice %13 {offsets = [5, 0, 0], sizes = [1, 2, 128], strides = [1, 1, 1]} : vector<8x2x128xf32> to vector<1x2x128xf32>
    %117 = vector.shape_cast %116 : vector<1x2x128xf32> to vector<2x128xf32>
    %118 = arith.truncf %115 : vector<2x32xf32> to vector<2x32xbf16>
    %cst_16 = arith.constant dense<0.000000e+00> : vector<2x128xf32>
    %119 = tpu.matmul %118, %1, %cst_16 {dimension_numbers = #tpu.dot_dimension_numbers<[1], [0], [0], [1], [0, 0, 1, 1], [], []>} : vector<2x32xbf16>, vector<32x128xbf16>, vector<2x128xf32> -> vector<2x128xf32>
    %120 = arith.addf %117, %119 : vector<2x128xf32>
    %121 = arith.negf %120 : vector<2x128xf32>
    %122 = math.exp %121 : vector<2x128xf32>
    %cst_17 = arith.constant 1.000000e+00 : f32
    %123 = vector.broadcast %cst_17 : f32 to vector<2x128xf32>
    %124 = arith.addf %123, %122 : vector<2x128xf32>
    %125 = arith.divf %123, %124 : vector<2x128xf32>
    %126 = vector.extract_strided_slice %120 {offsets = [0, 64], sizes = [2, 32], strides = [1, 1]} : vector<2x128xf32> to vector<2x32xf32>
    %127 = math.tanh %126 : vector<2x32xf32>
    %128 = vector.extract_strided_slice %125 {offsets = [0, 0], sizes = [2, 32], strides = [1, 1]} : vector<2x128xf32> to vector<2x32xf32>
    %129 = vector.extract_strided_slice %125 {offsets = [0, 32], sizes = [2, 32], strides = [1, 1]} : vector<2x128xf32> to vector<2x32xf32>
    %130 = vector.extract_strided_slice %125 {offsets = [0, 96], sizes = [2, 32], strides = [1, 1]} : vector<2x128xf32> to vector<2x32xf32>
    %131 = arith.mulf %129, %113 : vector<2x32xf32>
    %132 = arith.mulf %128, %127 : vector<2x32xf32>
    %133 = arith.addf %131, %132 : vector<2x32xf32>
    %134 = math.tanh %133 : vector<2x32xf32>
    %135 = arith.mulf %130, %134 : vector<2x32xf32>
    %136 = vector.extract_strided_slice %13 {offsets = [6, 0, 0], sizes = [1, 2, 128], strides = [1, 1, 1]} : vector<8x2x128xf32> to vector<1x2x128xf32>
    %137 = vector.shape_cast %136 : vector<1x2x128xf32> to vector<2x128xf32>
    %138 = arith.truncf %135 : vector<2x32xf32> to vector<2x32xbf16>
    %cst_18 = arith.constant dense<0.000000e+00> : vector<2x128xf32>
    %139 = tpu.matmul %138, %1, %cst_18 {dimension_numbers = #tpu.dot_dimension_numbers<[1], [0], [0], [1], [0, 0, 1, 1], [], []>} : vector<2x32xbf16>, vector<32x128xbf16>, vector<2x128xf32> -> vector<2x128xf32>
    %140 = arith.addf %137, %139 : vector<2x128xf32>
    %141 = arith.negf %140 : vector<2x128xf32>
    %142 = math.exp %141 : vector<2x128xf32>
    %cst_19 = arith.constant 1.000000e+00 : f32
    %143 = vector.broadcast %cst_19 : f32 to vector<2x128xf32>
    %144 = arith.addf %143, %142 : vector<2x128xf32>
    %145 = arith.divf %143, %144 : vector<2x128xf32>
    %146 = vector.extract_strided_slice %140 {offsets = [0, 64], sizes = [2, 32], strides = [1, 1]} : vector<2x128xf32> to vector<2x32xf32>
    %147 = math.tanh %146 : vector<2x32xf32>
    %148 = vector.extract_strided_slice %145 {offsets = [0, 0], sizes = [2, 32], strides = [1, 1]} : vector<2x128xf32> to vector<2x32xf32>
    %149 = vector.extract_strided_slice %145 {offsets = [0, 32], sizes = [2, 32], strides = [1, 1]} : vector<2x128xf32> to vector<2x32xf32>
    %150 = vector.extract_strided_slice %145 {offsets = [0, 96], sizes = [2, 32], strides = [1, 1]} : vector<2x128xf32> to vector<2x32xf32>
    %151 = arith.mulf %149, %133 : vector<2x32xf32>
    %152 = arith.mulf %148, %147 : vector<2x32xf32>
    %153 = arith.addf %151, %152 : vector<2x32xf32>
    %154 = math.tanh %153 : vector<2x32xf32>
    %155 = arith.mulf %150, %154 : vector<2x32xf32>
    %156 = vector.extract_strided_slice %13 {offsets = [7, 0, 0], sizes = [1, 2, 128], strides = [1, 1, 1]} : vector<8x2x128xf32> to vector<1x2x128xf32>
    %157 = vector.shape_cast %156 : vector<1x2x128xf32> to vector<2x128xf32>
    %158 = arith.truncf %155 : vector<2x32xf32> to vector<2x32xbf16>
    %cst_20 = arith.constant dense<0.000000e+00> : vector<2x128xf32>
    %159 = tpu.matmul %158, %1, %cst_20 {dimension_numbers = #tpu.dot_dimension_numbers<[1], [0], [0], [1], [0, 0, 1, 1], [], []>} : vector<2x32xbf16>, vector<32x128xbf16>, vector<2x128xf32> -> vector<2x128xf32>
    %160 = arith.addf %157, %159 : vector<2x128xf32>
    %161 = arith.negf %160 : vector<2x128xf32>
    %162 = math.exp %161 : vector<2x128xf32>
    %cst_21 = arith.constant 1.000000e+00 : f32
    %163 = vector.broadcast %cst_21 : f32 to vector<2x128xf32>
    %164 = arith.addf %163, %162 : vector<2x128xf32>
    %165 = arith.divf %163, %164 : vector<2x128xf32>
    %166 = vector.extract_strided_slice %160 {offsets = [0, 64], sizes = [2, 32], strides = [1, 1]} : vector<2x128xf32> to vector<2x32xf32>
    %167 = math.tanh %166 : vector<2x32xf32>
    %168 = vector.extract_strided_slice %165 {offsets = [0, 0], sizes = [2, 32], strides = [1, 1]} : vector<2x128xf32> to vector<2x32xf32>
    %169 = vector.extract_strided_slice %165 {offsets = [0, 32], sizes = [2, 32], strides = [1, 1]} : vector<2x128xf32> to vector<2x32xf32>
    %170 = vector.extract_strided_slice %165 {offsets = [0, 96], sizes = [2, 32], strides = [1, 1]} : vector<2x128xf32> to vector<2x32xf32>
    %171 = arith.mulf %169, %153 : vector<2x32xf32>
    %172 = arith.mulf %168, %167 : vector<2x32xf32>
    %173 = arith.addf %171, %172 : vector<2x32xf32>
    %174 = math.tanh %173 : vector<2x32xf32>
    %175 = arith.mulf %170, %174 : vector<2x32xf32>
    %c34 = arith.constant 34 : index
    %c0_22 = arith.constant 0 : index
    %176 = vector.load %arg1[%c34, %c0_22] : memref<48x128xf32, #tpu.memory_space<vmem>>, vector<1x32xf32>
    %c35 = arith.constant 35 : index
    %c0_23 = arith.constant 0 : index
    %177 = vector.load %arg1[%c35, %c0_23] : memref<48x128xf32, #tpu.memory_space<vmem>>, vector<1x32xf32>
    %c37 = arith.constant 37 : index
    %c0_24 = arith.constant 0 : index
    %178 = vector.load %arg1[%c37, %c0_24] : memref<48x128xf32, #tpu.memory_space<vmem>>, vector<1x32xf32>
    %179 = vector.extract_strided_slice %4 {offsets = [0, 7], sizes = [2, 1], strides = [1, 1]} : vector<2x8xf32> to vector<2x1xf32>
    %180 = vector.broadcast %179 : vector<2x1xf32> to vector<2x32xf32>
    %181 = vector.broadcast %177 : vector<1x32xf32> to vector<2x32xf32>
    %182 = arith.mulf %180, %181 : vector<2x32xf32>
    %183 = vector.broadcast %178 : vector<1x32xf32> to vector<2x32xf32>
    %184 = arith.addf %182, %183 : vector<2x32xf32>
    %185 = vector.extract_strided_slice %4 {offsets = [0, 6], sizes = [2, 1], strides = [1, 1]} : vector<2x8xf32> to vector<2x1xf32>
    %186 = vector.broadcast %185 : vector<2x1xf32> to vector<2x32xf32>
    %187 = vector.broadcast %176 : vector<1x32xf32> to vector<2x32xf32>
    %188 = arith.mulf %186, %187 : vector<2x32xf32>
    %189 = arith.addf %184, %188 : vector<2x32xf32>
    %c38 = arith.constant 38 : index
    %c0_25 = arith.constant 0 : index
    %190 = vector.load %arg1[%c38, %c0_25] : memref<48x128xf32, #tpu.memory_space<vmem>>, vector<1x32xf32>
    %c39 = arith.constant 39 : index
    %c0_26 = arith.constant 0 : index
    %191 = vector.load %arg1[%c39, %c0_26] : memref<48x128xf32, #tpu.memory_space<vmem>>, vector<1x32xf32>
    %c40 = arith.constant 40 : index
    %c0_27 = arith.constant 0 : index
    %192 = vector.load %arg1[%c40, %c0_27] : memref<48x128xf32, #tpu.memory_space<vmem>>, vector<1x1xf32>
    %193 = vector.broadcast %190 : vector<1x32xf32> to vector<2x32xf32>
    %194 = arith.mulf %175, %193 : vector<2x32xf32>
    %cst_28 = arith.constant dense<0.000000e+00> : vector<2xf32>
    %195 = vector.multi_reduction <add>, %194, %cst_28 [1] : vector<2x32xf32> to vector<2xf32>
    %196 = vector.shape_cast %195 : vector<2xf32> to vector<2x1xf32>
    %197 = vector.broadcast %191 : vector<1x32xf32> to vector<2x32xf32>
    %198 = arith.mulf %189, %197 : vector<2x32xf32>
    %cst_29 = arith.constant dense<0.000000e+00> : vector<2xf32>
    %199 = vector.multi_reduction <add>, %198, %cst_29 [1] : vector<2x32xf32> to vector<2xf32>
    %200 = vector.shape_cast %199 : vector<2xf32> to vector<2x1xf32>
    %201 = arith.addf %196, %200 : vector<2x1xf32>
    %202 = vector.broadcast %192 : vector<1x1xf32> to vector<2x1xf32>
    %203 = arith.addf %201, %202 : vector<2x1xf32>
    %c0_30 = arith.constant 0 : index
    %c0_31 = arith.constant 0 : index
    %204 = vector.load %arg2[%c0_30, %c0_31] : memref<2x1xf32, #tpu.memory_space<vmem>>, vector<2x1xf32>
    tpu.vector_store %arg2[%c0_30, %c0_31], %203 {strides = array<i32>} : memref<2x1xf32, #tpu.memory_space<vmem>>, vector<2x1xf32>,
    return
  }
}

</mosaic_0001>

<bundles_post_ra>
// kernel: tpu_custom_call.1
= control target key start
LH: loop header
LB: loop body
LE: loop exit
PB: predicated region body
PF: predicated region fallthrough
CT: control target
= control target key end

     0   :  { %7 = vsyncpa [#allocation3], 0  ;;  %s1236_s0 = inlined_call_operand.hbm [shape: f32[2,8], index: 0, kind: input, shape index: {}]   ;;  %s1237_s1 = inlined_call_operand.hbm [shape: f32[48,128], index: 1, kind: input, shape index: {}]   ;;  %s1238_s2 = inlined_call_operand.vmem [shape: f32[2,1], index: 2, kind: output, shape index: {}]  }
   0x1   :  { %8 = vsyncpa [#allocation5], 0  ;;  %s1039_s9 = smov [#allocation2]   ;;  %s1040_s11 = smov [#allocation4]  }
   0x2   :  { %s15_s10 = sshll.u32 %s1039_s9, 4  ;;  %s24_s12 = sshll.u32 %s1040_s11, 4  ;;  %s16_s10 = int_to_ptr.vmem [resolvable:$true] %s15_s10  ;;  %s1066_s12 = int_to_ptr.vmem [resolvable:$true] %s24_s12 }
   0x3   :  { %s991_s15 = scalar_lea.hbm %s1236_s0, 32 }
   0x4   :  { %p992_p0 = scmp.ne.s32.totalorder %s1236_s0, %s991_s15  ;;  %p995_p1 = scmp.lt.u32.totalorder %s991_s15, %s1236_s0 }
   0x6   :  { %p997_p2 = pnand %p995_p1, %p992_p0 }
   0x8   :  { %1000 = shalt.err (!%p997_p2)
}
   0x9   :  { %s1001_s20 = scalar_lea.vmem %s16_s10, 32  ;;  %p1006_p4 = scmp.lt.s32.totalorder %s16_s10, %s16_s10 }
   0xa   :  { %p1002_p3 = scmp.ne.s32.totalorder %s16_s10, %s1001_s20  ;;  %p1007_p5 = scmp.lt.s32.totalorder %s1001_s20, %s1001_s20 }
   0xc   :  { %p1008_p6 = por %p1007_p5, %p1006_p4 }
   0xe   :  { %p1009_p7 = pnand %p1008_p6, %p1002_p3 }
  0x10   :  { %1012 = shalt.err (!%p1009_p7)
}
  0x11   :  { %18 = dma.hbm_to_vmem [thread:$0]  %s1236_s0, 32, %s16_s10, [#allocation3]  }
  0x12   :  { %s1013_s25 = scalar_lea.hbm %s1237_s1, 768 }
  0x13   :  { %p1014_p8 = scmp.ne.s32.totalorder %s1237_s1, %s1013_s25  ;;  %p1017_p9 = scmp.lt.u32.totalorder %s1013_s25, %s1237_s1 }
  0x15   :  { %p1019_p10 = pnand %p1017_p9, %p1014_p8 }
  0x17   :  { %1022 = shalt.err (!%p1019_p10)
}
  0x18   :  { %s1023_s30 = scalar_lea.vmem %s1066_s12, 768  ;;  %p1028_p12 = scmp.lt.s32.totalorder %s1066_s12, %s1066_s12 }
  0x19   :  { %p1024_p11 = scmp.ne.s32.totalorder %s1066_s12, %s1023_s30  ;;  %p1029_p13 = scmp.lt.s32.totalorder %s1023_s30, %s1023_s30 }
  0x1b   :  { %p1030_p0 = por %p1029_p13, %p1028_p12 }
  0x1d   :  { %p1031_p1 = pnand %p1030_p0, %p1024_p11 }
  0x1f   :  { %1034 = shalt.err (!%p1031_p1)
}
  0x20   :  { %s1041_s0 = smov 128   ;;  %s1042_s3 = smov 8  }
  0x21   :  { %30 = dma.hbm_to_vmem [thread:$0]  %s1237_s1, 768, %s1066_s12, [#allocation5], %s1041_s0, %s1041_s0, %s1042_s3  }
  0x22   :  { %1035 = dma.done.wait [#allocation3], 32  }
  0x23   :  { %1036 = vsyncadd [#allocation3], 4294967264 }
  0x24   :  { %1037 = dma.done.wait [#allocation5], 768  }
  0x25   :  { %1038 = vsyncadd [#allocation5], 4294966528  ;;  %v1043_v0 = vmov 0.0   ;;  %vm1044_vm0 = vmmov 0   ;;  %v1103_v1 = vld [vmem:[#allocation2] sm:$0x3]  ;;  %v79_v9 = vlaneseq }
  0x26   :  { %849 = vmatprep.subr.bf16.mxu0 %v1043_v0  ;;  %853 = vmatprep.mubr.msk.bf16.mxu0 %vm1044_vm0, %v1043_v0  ;;  %v38_v2 = vld [vmem:[#allocation4] sm:$0xff]  ;;  %v39_v3 = vld [vmem:[#allocation4 + $0x8] sm:$0xff]  ;;  %v40_v5 = vld [vmem:[#allocation4 + $0x10] sm:$0xff]  ;;  %v1045_v8 = vmov 0   ;;  %s1046_s1 = smov 64   ;;  %s1047_s6 = smov 32  }
  0x27   :  { %857 = vmatprep.subr.bf16.mxu1 %v1043_v0  ;;  %861 = vmatprep.mubr.msk.bf16.mxu1 %vm1044_vm0, %v1043_v0  ;;  %v1106_v4 = vpack.c.bf16 %v39_v3, %v38_v2  ;;  %v41_v6 = vld [vmem:[#allocation4 + $0x18] sm:$0xff]  ;;  %v1124_v10 = vshrl.u32 %v79_v9, 7  ;;  %v1130_v18 = vld [vmem:[#allocation4 + $0x20] ss:$0 sm:$0xff]  ;;  %v1132_v20 = vld [vmem:[#allocation4 + $0x21] ss:$0 sm:$0xff] }
  0x28   :  { %47 = vxpose.xlu0.b32.start.end [1/1] (short) (narrow) %v1103_v1, 8  ;;  %v1109_v7 = vpack.c.bf16 %v41_v6, %v40_v5  ;;  %vm159_vm1 = vcmask 261120   ;;  %s1049_s7 = smov 96   ;;  %vm776_vm2 = vcmask 254976   ;;  %vm794_vm3 = vcmask 1024  }
  0x29   :  { %850 = vmatpush3.bf16.msra.mxu0 %v1106_v4  ;;  %858 = vmatpush3.bf16.msra.mxu1 %v1106_v4  ;;  %v81_v11 = vsub.s32 0, %v1124_v10  ;;  %v88_v38 = vsub.s32 1, %v1124_v10  ;;  %v95_v63 = vsub.s32 2, %v1124_v10 }
  0x2a   :  { %851 = vmatprep.subr.bf16.mxu0 %v1043_v0  ;;  %859 = vmatprep.subr.bf16.mxu1 %v1043_v0 }
  0x2d   :  { %852 = vmatpush3.bf16.msra.mxu0 %v1109_v7  ;;  %860 = vmatpush3.bf16.msra.mxu1 %v1109_v7 }
  0x2e   :  { %865 = vmatprep.subr.bf16.mxu0 %v1043_v0  ;;  %873 = vmatprep.subr.bf16.mxu1 %v1043_v0 }
  0x30   :  { %854 = vmatmul.mubr.bf16.vlgmr.msra.gmra.mrb[0].mxu0 %v1045_v8 }
  0x31   :  { %866 = vmatpush3.bf16.msra.mxu0 %v1106_v4  ;;  %869 = vmatprep.mubr.msk.bf16.mxu0 %vm1044_vm0, %v1043_v0 }
  0x32   :  { %867 = vmatprep.subr.bf16.mxu0 %v1043_v0 }
  0x35   :  { %868 = vmatpush3.bf16.msra.mxu0 %v1109_v7 }
  0x36   :  { %881 = vmatprep.subr.bf16.mxu0 %v1043_v0 }
  0xa8   :  { %v1127_v12 = vpop.trf.xlu0 }
  0xa9   :  { %v82_v13 = vrot.slane %v1127_v12, %v81_v11  ;;  %v89_v39 = vrot.slane %v1127_v12, %v88_v38  ;;  %v96_v2 = vrot.slane %v1127_v12, %v95_v63 }
  0xab   :  { %84 = vbcast.lane.b32.xlu0 %v82_v13, 256 }
 0x103   :  { %v197_v14 = vpop.f32.mrb[0].mxu0 }
 0x104   :  { %v855_v15 = vpop.f32.mrb[1].mxu0 }
 0x105   :  { %v200_v16 = vpop.f32.mrb[2].mxu0 }
 0x106   :  { %v856_v17 = vpop.f32.mrb[3].mxu0 }
 0x11d   :  { %v85_v19 = vpop.permute.xlu0 %84 }
 0x11e   :  { %v139_v21 = vmul.f32 %v1130_v18, %v85_v19 }
 0x120   :  { %v151_v22 = vadd.f32 %v1132_v20, %v139_v21 }
 0x122   :  { %v203_v23 = vadd.f32 %v197_v14, %v151_v22 }
 0x124   :  { %927 = vtanh.f32 %v203_v23  ;;  %v804_v25 = vmul.f32 -1.442695, %v203_v23 }
 0x126   :  { %929 = vpow2.f32 %v804_v25 }
 0x12e   :  { %v928_v24 = vpop.eup %927 }
 0x12f   :  { %213 = vrot.lane.b32.xlu1 %v928_v24, %s1046_s1 }
 0x130   :  { %v930_v26 = vpop.eup %929 }
 0x131   :  { %v207_v27 = vadd.f32 1.0, %v930_v26 }
 0x133   :  { %931 = vrcp.f32 %v207_v27 }
 0x13d   :  { %v932_v28 = vpop.eup %931 }
 0x13e   :  { %v211_v31 = vmul.f32 0.0, %v932_v28 }
 0x1a1   :  { %v214_v29 = vpop.permute.xlu1 %213 }
 0x1a2   :  { %v216_v30 = vmul.f32 %v932_v28, %v214_v29 }
 0x1a4   :  { %218 = vrot.lane.b32.xlu1 %v216_v30, %s1047_s6 }
 0x216   :  { %v219_v32 = vpop.permute.xlu1 %218 }
 0x217   :  { %v221_v33 = vadd.f32 %v219_v32, %v211_v31 }
 0x219   :  { %933 = vtanh.f32 %v221_v33 }
 0x223   :  { %v934_v34 = vpop.eup %933 }
 0x224   :  { %224 = vrot.lane.b32.xlu1 %v934_v34, %s1046_s1 }
 0x296   :  { %v225_v35 = vpop.permute.xlu1 %224 }
 0x297   :  { %v227_v36 = vmul.f32 %v932_v28, %v225_v35  ;;  %v102_v28 = vsub.s32 3, %v1124_v10 }
 0x299   :  { %v228_v37 = vpack.c.bf16 %v227_v36, %v227_v36  ;;  %v103_v30 = vrot.slane %v1127_v12, %v102_v28 }
 0x29b   :  { %230 = vrot.lane.b32.xlu1 %v228_v37, %s1047_s6 }
 0x29f   :  { %91 = vbcast.lane.b32.xlu1 %v89_v39, 256 }
 0x30d   :  { %v231_v40 = vpop.permute.xlu1 %230 }
 0x30e   :  { %862 = vmatmul.mubr.msk.bf16.vlgmr.msra.gmra.mrb[0].mxu1 %vm159_vm1, %v231_v40 }
 0x30f   :  { %874 = vmatpush3.bf16.msra.mxu1 %v1106_v4  ;;  %877 = vmatprep.mubr.msk.bf16.mxu1 %vm1044_vm0, %v1043_v0 }
 0x310   :  { %875 = vmatprep.subr.bf16.mxu1 %v1043_v0 }
 0x311   :  { %v92_v41 = vpop.permute.xlu1 %91 }
 0x312   :  { %v140_v42 = vmul.f32 %v1130_v18, %v92_v41 }
 0x313   :  { %876 = vmatpush3.bf16.msra.mxu1 %v1109_v7 }
 0x314   :  { %889 = vmatprep.subr.bf16.mxu1 %v1043_v0  ;;  %v152_v43 = vadd.f32 %v1132_v20, %v140_v42 }
 0x3e1   :  { %v269_v44 = vpop.f32.mrb[0].mxu1 }
 0x3e2   :  { %v275_v45 = vadd.f32 %v269_v44, %v152_v43  ;;  %v863_v46 = vpop.f32.mrb[1].mxu1 }
 0x3e3   :  { %v272_v47 = vpop.f32.mrb[2].mxu1 }
 0x3e4   :  { %935 = vtanh.f32 %v275_v45  ;;  %v864_v48 = vpop.f32.mrb[3].mxu1  ;;  %v806_v50 = vmul.f32 -1.442695, %v275_v45 }
 0x3e6   :  { %937 = vpow2.f32 %v806_v50 }
 0x3ee   :  { %v936_v49 = vpop.eup %935 }
 0x3ef   :  { %285 = vrot.lane.b32.xlu1 %v936_v49, %s1046_s1 }
 0x3f0   :  { %v938_v51 = vpop.eup %937 }
 0x3f1   :  { %v279_v52 = vadd.f32 1.0, %v938_v51 }
 0x3f3   :  { %939 = vrcp.f32 %v279_v52 }
 0x3fd   :  { %v940_v53 = vpop.eup %939 }
 0x3fe   :  { %v283_v56 = vmul.f32 %v940_v53, %v221_v33 }
 0x461   :  { %v286_v54 = vpop.permute.xlu1 %285 }
 0x462   :  { %v288_v55 = vmul.f32 %v940_v53, %v286_v54 }
 0x464   :  { %290 = vrot.lane.b32.xlu1 %v288_v55, %s1047_s6 }
 0x4d6   :  { %v291_v57 = vpop.permute.xlu1 %290 }
 0x4d7   :  { %v293_v58 = vadd.f32 %v291_v57, %v283_v56 }
 0x4d9   :  { %941 = vtanh.f32 %v293_v58 }
 0x4e3   :  { %v942_v59 = vpop.eup %941 }
 0x4e4   :  { %296 = vrot.lane.b32.xlu1 %v942_v59, %s1046_s1 }
 0x556   :  { %v297_v60 = vpop.permute.xlu1 %296 }
 0x557   :  { %v299_v61 = vmul.f32 %v940_v53, %v297_v60  ;;  %v109_v53 = vsub.s32 4, %v1124_v10 }
 0x559   :  { %v300_v62 = vpack.c.bf16 %v299_v61, %v299_v61  ;;  %v110_v55 = vrot.slane %v1127_v12, %v109_v53 }
 0x55b   :  { %302 = vrot.lane.b32.xlu1 %v300_v62, %s1047_s6 }
 0x55f   :  { %98 = vbcast.lane.b32.xlu1 %v96_v2, 256 }
 0x5cd   :  { %v303_v3 = vpop.permute.xlu1 %302 }
 0x5ce   :  { %870 = vmatmul.mubr.msk.bf16.vlgmr.msra.gmra.mrb[4].mxu0 %vm159_vm1, %v303_v3 }
 0x5cf   :  { %882 = vmatpush3.bf16.msra.mxu0 %v1106_v4  ;;  %885 = vmatprep.mubr.msk.bf16.mxu0 %vm1044_vm0, %v1043_v0 }
 0x5d0   :  { %883 = vmatprep.subr.bf16.mxu0 %v1043_v0 }
 0x5d1   :  { %v99_v5 = vpop.permute.xlu1 %98 }
 0x5d2   :  { %v141_v6 = vmul.f32 %v1130_v18, %v99_v5 }
 0x5d3   :  { %884 = vmatpush3.bf16.msra.mxu0 %v1109_v7 }
 0x5d4   :  { %897 = vmatprep.subr.bf16.mxu0 %v1043_v0  ;;  %v153_v8 = vadd.f32 %v1132_v20, %v141_v6 }
 0x6a1   :  { %v341_v9 = vpop.f32.mrb[4].mxu0 }
 0x6a2   :  { %v347_v11 = vadd.f32 %v341_v9, %v153_v8  ;;  %v871_v13 = vpop.f32.mrb[5].mxu0 }
 0x6a3   :  { %v344_v14 = vpop.f32.mrb[6].mxu0 }
 0x6a4   :  { %943 = vtanh.f32 %v347_v11  ;;  %v872_v15 = vpop.f32.mrb[7].mxu0  ;;  %v808_v17 = vmul.f32 -1.442695, %v347_v11 }
 0x6a6   :  { %945 = vpow2.f32 %v808_v17 }
 0x6ae   :  { %v944_v16 = vpop.eup %943 }
 0x6af   :  { %357 = vrot.lane.b32.xlu1 %v944_v16, %s1046_s1 }
 0x6b0   :  { %v946_v19 = vpop.eup %945 }
 0x6b1   :  { %v351_v21 = vadd.f32 1.0, %v946_v19 }
 0x6b3   :  { %947 = vrcp.f32 %v351_v21 }
 0x6bd   :  { %v948_v22 = vpop.eup %947 }
 0x6be   :  { %v355_v25 = vmul.f32 %v948_v22, %v293_v58 }
 0x721   :  { %v358_v23 = vpop.permute.xlu1 %357 }
 0x722   :  { %v360_v24 = vmul.f32 %v948_v22, %v358_v23 }
 0x724   :  { %362 = vrot.lane.b32.xlu1 %v360_v24, %s1047_s6 }
 0x796   :  { %v363_v26 = vpop.permute.xlu1 %362 }
 0x797   :  { %v365_v27 = vadd.f32 %v363_v26, %v355_v25 }
 0x799   :  { %949 = vtanh.f32 %v365_v27 }
 0x7a3   :  { %v950_v29 = vpop.eup %949 }
 0x7a4   :  { %368 = vrot.lane.b32.xlu0 %v950_v29, %s1046_s1 }
 0x7a8   :  { %105 = vbcast.lane.b32.xlu0 %v103_v30, 256 }
 0x816   :  { %v369_v31 = vpop.permute.xlu0 %368 }
 0x817   :  { %v371_v32 = vmul.f32 %v948_v22, %v369_v31  ;;  %v116_v22 = vsub.s32 5, %v1124_v10 }
 0x819   :  { %v372_v33 = vpack.c.bf16 %v371_v32, %v371_v32  ;;  %v117_v24 = vrot.slane %v1127_v12, %v116_v22 }
 0x81a   :  { %v106_v35 = vpop.permute.xlu0 %105 }
 0x81b   :  { %374 = vrot.lane.b32.xlu1 %v372_v33, %s1047_s6  ;;  %v142_v36 = vmul.f32 %v1130_v18, %v106_v35 }
 0x81d   :  { %v154_v37 = vadd.f32 %v1132_v20, %v142_v36 }
 0x88d   :  { %v375_v34 = vpop.permute.xlu1 %374 }
 0x88e   :  { %878 = vmatmul.mubr.msk.bf16.vlgmr.msra.gmra.mrb[4].mxu1 %vm159_vm1, %v375_v34 }
 0x88f   :  { %890 = vmatpush3.bf16.msra.mxu1 %v1106_v4  ;;  %893 = vmatprep.mubr.msk.bf16.mxu1 %vm1044_vm0, %v1043_v0 }
 0x890   :  { %891 = vmatprep.subr.bf16.mxu1 %v1043_v0 }
 0x893   :  { %892 = vmatpush3.bf16.msra.mxu1 %v1109_v7 }
 0x894   :  { %905 = vmatprep.subr.bf16.mxu1 %v1043_v0 }
 0x961   :  { %v413_v38 = vpop.f32.mrb[4].mxu1 }
 0x962   :  { %v419_v39 = vadd.f32 %v413_v38, %v154_v37  ;;  %v879_v40 = vpop.f32.mrb[5].mxu1 }
 0x963   :  { %v416_v41 = vpop.f32.mrb[6].mxu1 }
 0x964   :  { %951 = vtanh.f32 %v419_v39  ;;  %v880_v42 = vpop.f32.mrb[7].mxu1  ;;  %v810_v44 = vmul.f32 -1.442695, %v419_v39 }
 0x966   :  { %953 = vpow2.f32 %v810_v44  ;;  %v123_v44 = vsub.s32 6, %v1124_v10 }
 0x96e   :  { %v952_v43 = vpop.eup %951 }
 0x96f   :  { %429 = vrot.lane.b32.xlu1 %v952_v43, %s1046_s1 }
 0x970   :  { %v954_v45 = vpop.eup %953 }
 0x971   :  { %v423_v46 = vadd.f32 1.0, %v954_v45 }
 0x973   :  { %955 = vrcp.f32 %v423_v46  ;;  %v124_v46 = vrot.slane %v1127_v12, %v123_v44 }
 0x97d   :  { %v956_v47 = vpop.eup %955 }
 0x97e   :  { %v427_v50 = vmul.f32 %v956_v47, %v365_v27 }
 0x9e1   :  { %v430_v48 = vpop.permute.xlu1 %429 }
 0x9e2   :  { %v432_v49 = vmul.f32 %v956_v47, %v430_v48 }
 0x9e4   :  { %434 = vrot.lane.b32.xlu0 %v432_v49, %s1047_s6 }
 0xa56   :  { %v435_v51 = vpop.permute.xlu0 %434 }
 0xa57   :  { %v437_v52 = vadd.f32 %v435_v51, %v427_v50 }
 0xa59   :  { %957 = vtanh.f32 %v437_v52 }
 0xa63   :  { %v958_v54 = vpop.eup %957 }
 0xa64   :  { %440 = vrot.lane.b32.xlu1 %v958_v54, %s1046_s1 }
 0xa68   :  { %112 = vbcast.lane.b32.xlu1 %v110_v55, 256 }
 0xad6   :  { %v441_v56 = vpop.permute.xlu1 %440 }
 0xad7   :  { %v443_v57 = vmul.f32 %v956_v47, %v441_v56 }
 0xad9   :  { %v444_v58 = vpack.c.bf16 %v443_v57, %v443_v57 }
 0xada   :  { %v113_v60 = vpop.permute.xlu1 %112 }
 0xadb   :  { %446 = vrot.lane.b32.xlu0 %v444_v58, %s1047_s6  ;;  %v143_v61 = vmul.f32 %v1130_v18, %v113_v60 }
 0xadd   :  { %v155_v62 = vadd.f32 %v1132_v20, %v143_v61 }
 0xb4d   :  { %v447_v59 = vpop.permute.xlu0 %446 }
 0xb4e   :  { %886 = vmatmul.mubr.msk.bf16.vlgmr.msra.gmra.mrb[8].mxu0 %vm159_vm1, %v447_v59 }
 0xb4f   :  { %898 = vmatpush3.bf16.msra.mxu0 %v1106_v4  ;;  %901 = vmatprep.mubr.msk.bf16.mxu0 %vm1044_vm0, %v1043_v0 }
 0xb50   :  { %899 = vmatprep.subr.bf16.mxu0 %v1043_v0 }
 0xb53   :  { %900 = vmatpush3.bf16.msra.mxu0 %v1109_v7 }
 0xc21   :  { %v485_v63 = vpop.f32.mrb[8].mxu0 }
 0xc22   :  { %v491_v2 = vadd.f32 %v485_v63, %v155_v62  ;;  %v887_v3 = vpop.f32.mrb[9].mxu0 }
 0xc23   :  { %v488_v5 = vpop.f32.mrb[10].mxu0 }
 0xc24   :  { %959 = vtanh.f32 %v491_v2  ;;  %v888_v6 = vpop.f32.mrb[11].mxu0  ;;  %v812_v9 = vmul.f32 -1.442695, %v491_v2 }
 0xc26   :  { %961 = vpow2.f32 %v812_v9  ;;  %v130_v9 = vsub.s32 7, %v1124_v10 }
 0xc2e   :  { %v960_v8 = vpop.eup %959 }
 0xc2f   :  { %501 = vrot.lane.b32.xlu0 %v960_v8, %s1046_s1 }
 0xc30   :  { %v962_v11 = vpop.eup %961 }
 0xc31   :  { %v495_v13 = vadd.f32 1.0, %v962_v11 }
 0xc33   :  { %963 = vrcp.f32 %v495_v13  ;;  %v131_v13 = vrot.slane %v1127_v12, %v130_v9 }
 0xc3d   :  { %v964_v14 = vpop.eup %963 }
 0xc3e   :  { %v499_v17 = vmul.f32 %v964_v14, %v437_v52 }
 0xca1   :  { %v502_v15 = vpop.permute.xlu0 %501 }
 0xca2   :  { %v504_v16 = vmul.f32 %v964_v14, %v502_v15 }
 0xca4   :  { %506 = vrot.lane.b32.xlu1 %v504_v16, %s1047_s6 }
 0xd16   :  { %v507_v19 = vpop.permute.xlu1 %506 }
 0xd17   :  { %v509_v21 = vadd.f32 %v507_v19, %v499_v17 }
 0xd19   :  { %965 = vtanh.f32 %v509_v21 }
 0xd23   :  { %v966_v23 = vpop.eup %965 }
 0xd24   :  { %512 = vrot.lane.b32.xlu0 %v966_v23, %s1046_s1 }
 0xd28   :  { %119 = vbcast.lane.b32.xlu0 %v117_v24, 256 }
 0xd96   :  { %v513_v25 = vpop.permute.xlu0 %512 }
 0xd97   :  { %v515_v26 = vmul.f32 %v964_v14, %v513_v25 }
 0xd99   :  { %v516_v27 = vpack.c.bf16 %v515_v26, %v515_v26 }
 0xd9a   :  { %v120_v29 = vpop.permute.xlu0 %119 }
 0xd9b   :  { %518 = vrot.lane.b32.xlu1 %v516_v27, %s1047_s6  ;;  %v144_v30 = vmul.f32 %v1130_v18, %v120_v29 }
 0xd9d   :  { %v156_v31 = vadd.f32 %v1132_v20, %v144_v30 }
 0xe0d   :  { %v519_v28 = vpop.permute.xlu1 %518 }
 0xe0e   :  { %894 = vmatmul.mubr.msk.bf16.vlgmr.msra.gmra.mrb[8].mxu1 %vm159_vm1, %v519_v28 }
 0xe0f   :  { %906 = vmatpush3.bf16.msra.mxu1 %v1106_v4  ;;  %909 = vmatprep.mubr.msk.bf16.mxu1 %vm1044_vm0, %v1043_v0 }
 0xe10   :  { %907 = vmatprep.subr.bf16.mxu1 %v1043_v0 }
 0xe13   :  { %908 = vmatpush3.bf16.msra.mxu1 %v1109_v7 }
 0xee1   :  { %v557_v32 = vpop.f32.mrb[8].mxu1 }
 0xee2   :  { %v563_v33 = vadd.f32 %v557_v32, %v156_v31  ;;  %v895_v34 = vpop.f32.mrb[9].mxu1 }
 0xee3   :  { %v560_v35 = vpop.f32.mrb[10].mxu1 }
 0xee4   :  { %967 = vtanh.f32 %v563_v33  ;;  %v896_v36 = vpop.f32.mrb[11].mxu1  ;;  %v814_v4 = vmul.f32 -1.442695, %v563_v33  ;;  %v1050_v33 = vmov 6  }
 0xee5   :  { %926 = vset.pattern.permute.xlu0 %v1050_v33 }
 0xee6   :  { %969 = vpow2.f32 %v814_v4 }
 0xeee   :  { %v968_v37 = vpop.eup %967 }
 0xeef   :  { %573 = vrot.lane.b32.xlu1 %v968_v37, %s1046_s1 }
 0xef0   :  { %v970_v38 = vpop.eup %969 }
 0xef1   :  { %v567_v0 = vadd.f32 1.0, %v970_v38 }
 0xef3   :  { %971 = vrcp.f32 %v567_v0 }
 0xefd   :  { %v972_v7 = vpop.eup %971 }
 0xefe   :  { %v571_v41 = vmul.f32 %v972_v7, %v509_v21 }
 0xf61   :  { %v574_v39 = vpop.permute.xlu1 %573 }
 0xf62   :  { %v576_v40 = vmul.f32 %v972_v7, %v574_v39  ;;  %v819_v39 = vld [vmem:[#allocation4 + $0x23] ss:$0 sm:$0xff] }
 0xf64   :  { %578 = vrot.lane.b32.xlu0 %v576_v40, %s1047_s6  ;;  %v821_v40 = vld [vmem:[#allocation4 + $0x22] ss:$0 sm:$0xff] }
 0xfd6   :  { %v579_v42 = vpop.permute.xlu0 %578 }
 0xfd7   :  { %v581_v43 = vadd.f32 %v579_v42, %v571_v41  ;;  %v820_v42 = vld [vmem:[#allocation4 + $0x25] ss:$0 sm:$0xff] }
 0xfd9   :  { %973 = vtanh.f32 %v581_v43 }
 0xfe3   :  { %v974_v45 = vpop.eup %973 }
 0xfe4   :  { %584 = vrot.lane.b32.xlu1 %v974_v45, %s1046_s1 }
 0xfe8   :  { %126 = vbcast.lane.b32.xlu1 %v124_v46, 256 }
0x1056   :  { %v585_v47 = vpop.permute.xlu1 %584 }
0x1057   :  { %v587_v48 = vmul.f32 %v972_v7, %v585_v47  ;;  %v823_v47 = vld [vmem:[#allocation4 + $0x27] ss:$0 sm:$0xff] }
0x1059   :  { %v588_v49 = vpack.c.bf16 %v587_v48, %v587_v48 }
0x105a   :  { %v127_v51 = vpop.permute.xlu1 %126 }
0x105b   :  { %590 = vrot.lane.b32.xlu0 %v588_v49, %s1047_s6  ;;  %v145_v52 = vmul.f32 %v1130_v18, %v127_v51 }
0x105d   :  { %v157_v53 = vadd.f32 %v1132_v20, %v145_v52 }
0x10cd   :  { %v591_v50 = vpop.permute.xlu0 %590 }
0x10ce   :  { %902 = vmatmul.mubr.msk.bf16.vlgmr.msra.gmra.mrb[12].mxu0 %vm159_vm1, %v591_v50 }
0x11a1   :  { %v629_v54 = vpop.f32.mrb[12].mxu0 }
0x11a2   :  { %v635_v55 = vadd.f32 %v629_v54, %v157_v53  ;;  %v903_v56 = vpop.f32.mrb[13].mxu0  ;;  %v824_v53 = vld [vmem:[#allocation4 + $0x28] ss:$0 sm:$0xff] }
0x11a3   :  { %v632_v57 = vpop.f32.mrb[14].mxu0 }
0x11a4   :  { %975 = vtanh.f32 %v635_v55  ;;  %v904_v58 = vpop.f32.mrb[15].mxu0  ;;  %v816_v60 = vmul.f32 -1.442695, %v635_v55 }
0x11a6   :  { %977 = vpow2.f32 %v816_v60 }
0x11ae   :  { %v976_v59 = vpop.eup %975 }
0x11af   :  { %645 = vrot.lane.b32.xlu0 %v976_v59, %s1046_s1 }
0x11b0   :  { %v978_v61 = vpop.eup %977 }
0x11b1   :  { %v639_v62 = vadd.f32 1.0, %v978_v61 }
0x11b3   :  { %979 = vrcp.f32 %v639_v62 }
0x11bd   :  { %v980_v63 = vpop.eup %979 }
0x11be   :  { %v643_v5 = vmul.f32 %v980_v63, %v581_v43 }
0x1221   :  { %v646_v2 = vpop.permute.xlu0 %645 }
0x1222   :  { %v648_v3 = vmul.f32 %v980_v63, %v646_v2 }
0x1224   :  { %650 = vrot.lane.b32.xlu1 %v648_v3, %s1047_s6 }
0x1296   :  { %v651_v6 = vpop.permute.xlu1 %650 }
0x1297   :  { %v653_v8 = vadd.f32 %v651_v6, %v643_v5 }
0x1299   :  { %981 = vtanh.f32 %v653_v8 }
0x12a3   :  { %v982_v11 = vpop.eup %981 }
0x12a4   :  { %656 = vrot.lane.b32.xlu0 %v982_v11, %s1046_s1 }
0x12a8   :  { %133 = vbcast.lane.b32.xlu0 %v131_v13, 256 }
0x1316   :  { %v657_v14 = vpop.permute.xlu0 %656 }
0x1317   :  { %v659_v15 = vmul.f32 %v980_v63, %v657_v14 }
0x1319   :  { %v660_v16 = vpack.c.bf16 %v659_v15, %v659_v15 }
0x131a   :  { %v134_v19 = vpop.permute.xlu0 %133 }
0x131b   :  { %662 = vrot.lane.b32.xlu1 %v660_v16, %s1047_s6  ;;  %v146_v21 = vmul.f32 %v1130_v18, %v134_v19  ;;  %v822_v18 = vld [vmem:[#allocation4 + $0x26] ss:$0 sm:$0xff] }
0x131d   :  { %v158_v22 = vadd.f32 %v1132_v20, %v146_v21  ;;  %v1048_v20 = vmov 7  }
0x131e   :  { %925 = vset.pattern.permute.xlu1 %v1048_v20 }
0x138d   :  { %v663_v17 = vpop.permute.xlu1 %662 }
0x138e   :  { %910 = vmatmul.mubr.msk.bf16.vlgmr.msra.gmra.mrb[12].mxu1 %vm159_vm1, %v663_v17 }
0x1461   :  { %v701_v10 = vpop.f32.mrb[12].mxu1 }
0x1462   :  { %v707_v23 = vadd.f32 %v701_v10, %v158_v22  ;;  %v911_v24 = vpop.f32.mrb[13].mxu1 }
0x1463   :  { %v704_v25 = vpop.f32.mrb[14].mxu1 }
0x1464   :  { %983 = vtanh.f32 %v707_v23  ;;  %v912_v12 = vpop.f32.mrb[15].mxu1  ;;  %v818_v27 = vmul.f32 -1.442695, %v707_v23 }
0x1466   :  { %985 = vpow2.f32 %v818_v27 }
0x146e   :  { %v984_v26 = vpop.eup %983 }
0x146f   :  { %717 = vrot.lane.b32.xlu1 %v984_v26, %s1046_s1 }
0x1470   :  { %v986_v28 = vpop.eup %985 }
0x1471   :  { %v711_v29 = vadd.f32 1.0, %v986_v28 }
0x1473   :  { %987 = vrcp.f32 %v711_v29 }
0x147d   :  { %v988_v30 = vpop.eup %987 }
0x147e   :  { %v715_v34 = vmul.f32 %v988_v30, %v653_v8 }
0x14e1   :  { %v718_v31 = vpop.permute.xlu1 %717 }
0x14e2   :  { %v720_v32 = vmul.f32 %v988_v30, %v718_v31 }
0x14e4   :  { %722 = vrot.lane.b32.xlu0 %v720_v32, %s1047_s6 }
0x14e8   :  { %768 = vrot.lane.b32.xlu0 %v822_v18, %s1049_s7 }
0x14ec   :  { %751 = vperm.xlu0 %926, %v1103_v1  }
0x1556   :  { %v723_v35 = vpop.permute.xlu0 %722 }
0x1557   :  { %v725_v36 = vadd.f32 %v723_v35, %v715_v34 }
0x1559   :  { %989 = vtanh.f32 %v725_v36 }
0x155a   :  { %v769_v38 = vpop.permute.xlu0 %768 }
0x1563   :  { %v990_v37 = vpop.eup %989 }
0x1564   :  { %728 = vrot.lane.b32.xlu1 %v990_v37, %s1046_s1 }
0x1568   :  { %737 = vperm.xlu1 %925, %v1103_v1  }
0x156b   :  { %v752_v41 = vpop.permute.xlu0 %751 }
0x156c   :  { %v758_v45 = vmul.f32 %v821_v40, %v752_v41 }
0x15d6   :  { %v729_v4 = vpop.permute.xlu1 %728 }
0x15d7   :  { %v731_v0 = vmul.f32 %v988_v30, %v729_v4 }
0x15d9   :  { %v771_v7 = vmul.f32 %v769_v38, %v731_v0 }
0x15db   :  { %773 = vrot.lane.b32.xlu1 %v771_v7, %s1047_s6 }
0x15e7   :  { %v738_v43 = vpop.permute.xlu1 %737 }
0x15e8   :  { %v744_v44 = vmul.f32 %v819_v39, %v738_v43 }
0x15ea   :  { %v749_v46 = vadd.f32 %v820_v42, %v744_v44 }
0x15ec   :  { %v759_v48 = vadd.f32 %v758_v45, %v749_v46 }
0x15ee   :  { %v784_v49 = vmul.f32 %v823_v47, %v759_v48 }
0x15f0   :  { %v785_v50 = vsel %vm776_vm2, %v784_v49, 0.0 }
0x15f1   :  { %786 = vadd.xlane.f32.xlu0 %v785_v50 }
0x164d   :  { %v774_v1 = vpop.permute.xlu1 %773 }
0x164e   :  { %v777_v51 = vsel %vm776_vm2, %v774_v1, 0.0 }
0x164f   :  { %778 = vadd.xlane.f32.xlu1 %v777_v51 }
0x167e   :  { %v787_v52 = vpop.xlane.xlu0 %786 }
0x16dc   :  { %v779_v54 = vpop.xlane.xlu1 %778 }
0x16dd   :  { %v788_v55 = vadd.f32 %v787_v52, %v779_v54 }
0x16df   :  { %v793_v56 = vadd.f32 %v824_v53, %v788_v55 }
0x16e1   :  { %795 = vst.msk [vmem:[%s1238_s2] sm:$0x3] %vm794_vm3, %v793_v56 }
0x16e2   :  { %800 = vsyncpa [#allocation3], 1 }
0x16e3   :  { %801 = vsyncpa [#allocation5], 1 }

</bundles_post_ra>
